<compile_context>
chip_gen: v6e
topology: v6e:2x2x1
jax: 0.10.0
libtpu: 0.0.40
codegen_flags: <defaults>
</compile_context>

<pallas_src>
import jax
import jax.numpy as jnp
import numpy as np
from jax.experimental import pallas as pl
from jax.experimental.pallas import tpu as pltpu

_LANE = 128


def _round_up(v, m):
    return ((v + m - 1) // m) * m


def _pad2(a, rows, cols):
    return jnp.pad(a, ((0, rows - a.shape[0]), (0, cols - a.shape[1])))


def _choose_group_block(batch, slice_len, max_rows=1024):
    """How many flattened output rows (groups of `slice_len` input rows) per grid step."""
    if batch * slice_len <= max_rows:
        return batch                              # single grid step, all resident
    gb = min(batch, max(8, (max_rows // max(slice_len, 1)) // 8 * 8))
    gb -= gb % 8                                  # keep sublane-aligned blocks
    while gb >= 8:
        if batch % gb == 0:
            return gb
        gb -= 8
    return batch


def _make_kernel(gb, s_len):
    def kernel(x_ref, w1, b1, w2, b2, w3, b3, w4, b4, w5, b5, o_ref):
        # ---- 4 x (Linear + ReLU); rows are independent (s, b) samples --------
        h = x_ref[...]                                          # (gb*s_len, N) f32
        for w_ref, b_ref in ((w1, b1), (w2, b2), (w3, b3), (w4, b4)):
            z = jnp.dot(h.astype(jnp.bfloat16), w_ref[...],
                        preferred_element_type=jnp.float32) + b_ref[...]
            h = jnp.maximum(z, 0.0)                             # f32 accumulator

        # ---- final Linear(S*H -> N), fused ------------------------------------
        # PyTorch's `.view(B, -1)` makes flat row b' = concat of S consecutive
        # (s, b) rows; W5 arrives reshaped to (S, Hp, Np), so the final GEMM is
        # an accumulation over the S chunks — no (B, S*H) reshape needed.
        hp = h.shape[-1]
        hg = h.reshape(gb, s_len, hp)                           # leading-dim split
        acc = jnp.zeros((gb, o_ref.shape[-1]), dtype=jnp.float32)
        for s in range(s_len):                                  # static, unrolled
            acc = acc + jnp.dot(hg[:, s, :].astype(jnp.bfloat16), w5[s],
                                preferred_element_type=jnp.float32)
        o_ref[...] = acc + b5[...]
    return kernel


def ffn_forward(x, params):
    """x: (slice_len, batch, num_strains) float32 -> (batch, num_strains) float32."""
    w1, b1, w2, b2, w3, b3, w4, b4, w5, b5 = params
    S, B, N = x.shape
    H = w1.shape[1]
    assert w5.shape[0] == S * H, "final layer expects slice_len * hidden inputs"

    # Lane-pad every layer's OUTPUT width to a multiple of 128. Zero padding is
    # mathematically exact: padded units have zero weight & bias -> ReLU -> 0,
    # and padded W5 rows only ever multiply those exact zeros.
    d1 = _round_up(H, _LANE)
    d2 = _round_up(2 * H, _LANE)
    d3 = _round_up(4 * H, _LANE)
    d4 = _round_up(H, _LANE)
    dN = _round_up(N, _LANE)

    bf16 = jnp.bfloat16
    w1p = _pad2(w1, N, d1).astype(bf16)           # input K=N stays unpadded (MXU pads K internally)
    w2p = _pad2(w2, d1, d2).astype(bf16)
    w3p = _pad2(w3, d2, d3).astype(bf16)
    w4p = _pad2(w4, d3, d4).astype(bf16)
    # W5: (S*H, N) -> (S, H, N) -> zero-pad to (S, d4, dN). Row k = r*H + j of
    # the original maps to [r, j, :], matching the `.view(B, -1)` flattening.
    w5p = jnp.pad(w5.reshape(S, H, N),
                  ((0, 0), (0, d4 - H), (0, dN - N))).astype(bf16)
    b1p = _pad2(b1, 1, d1)
    b2p = _pad2(b2, 1, d2)
    b3p = _pad2(b3, 1, d3)
    b4p = _pad2(b4, 1, d4)
    b5p = _pad2(b5, 1, dN)

    # (S, B, N) row-major == (S*B, N) row-major; rows stay in (s, b) order.
    x2d = jnp.reshape(x, (S * B, N))

    GB = _choose_group_block(B, S)                # flat output rows per grid step
    TM = GB * S                                   # input rows per grid step
    grid = (B // GB,)

    flops = 2 * S * B * (N * d1 + d1 * d2 + d2 * d3 + d3 * d4) + 2 * B * S * d4 * dN
    bytes_accessed = (
        S * B * N * 4 + B * dN * 4
        + sum(int(w.size) * 2 for w in (w1p, w2p, w3p, w4p, w5p))
        + sum(int(b.size) * 4 for b in (b1p, b2p, b3p, b4p, b5p)))

    out_padded = pl.pallas_call(
        _make_kernel(GB, S),
        out_shape=jax.ShapeDtypeStruct((B, dN), jnp.float32),
        grid=grid,
        in_specs=[
            pl.BlockSpec((TM, N), lambda i: (i, 0)),          # x row tile
            pl.BlockSpec(w1p.shape, lambda i: (0, 0)),        # weights: VMEM-resident
            pl.BlockSpec(b1p.shape, lambda i: (0, 0)),
            pl.BlockSpec(w2p.shape, lambda i: (0, 0)),
            pl.BlockSpec(b2p.shape, lambda i: (0, 0)),
            pl.BlockSpec(w3p.shape, lambda i: (0, 0)),
            pl.BlockSpec(b3p.shape, lambda i: (0, 0)),
            pl.BlockSpec(w4p.shape, lambda i: (0, 0)),
            pl.BlockSpec(b4p.shape, lambda i: (0, 0)),
            pl.BlockSpec(w5p.shape, lambda i: (0, 0, 0)),
            pl.BlockSpec(b5p.shape, lambda i: (0, 0)),
        ],
        out_specs=pl.BlockSpec((GB, dN), lambda i: (i, 0)),
        compiler_params=pltpu.CompilerParams(
            dimension_semantics=("parallel",),
            vmem_limit_bytes=32 * 1024 * 1024),
        cost_estimate=pl.CostEstimate(flops=int(flops), transcendentals=0,
                                      bytes_accessed=int(bytes_accessed)),
    )(x2d, w1p, b1p, w2p, b2p, w3p, b3p, w4p, b4p, w5p, b5p)

    return out_padded[:, :N]


# ----------------------------------------------------------------------------
# Deterministic parameter init (PyTorch nn.Linear style: U(-1/sqrt(in), 1/sqrt(in)))
# Weights are stored as (in, out) so the forward computes x @ W + b.
# ----------------------------------------------------------------------------
def init_params(key, num_strains, hidden, slice_len):
    dims = [
        (num_strains, hidden),
        (hidden, 2 * hidden),
        (2 * hidden, 4 * hidden),
        (4 * hidden, hidden),
        (slice_len * hidden, num_strains),
    ]
    params = []
    for (fan_in, fan_out) in dims:
        key, kw, kb = jax.random.split(key, 3)
        bound = 1.0 / np.sqrt(fan_in)
        w = jax.random.uniform(kw, (fan_in, fan_out), jnp.float32, -bound, bound)
        b = jax.random.uniform(kb, (1, fan_out), jnp.float32, -bound, bound)
        params += [w, b]
    return tuple(params)


def ffn_reference(x, params):
    """Plain-JAX reference mirroring the kernel math (bf16 inputs, f32 accumulation)."""
    w1, b1, w2, b2, w3, b3, w4, b4, w5, b5 = params
    S, B, N = x.shape
    h = jnp.reshape(x, (S * B, N))
    for w, b in ((w1, b1), (w2, b2), (w3, b3), (w4, b4)):
        h = jnp.maximum(
            jnp.dot(h.astype(jnp.bfloat16), w.astype(jnp.bfloat16),
                    preferred_element_type=jnp.float32) + b, 0.0)
    flat = jnp.reshape(h, (B, -1))        # == PyTorch `.view(batch_size, -1)`
    return jnp.dot(flat.astype(jnp.bfloat16), w5.astype(jnp.bfloat16),
                   preferred_element_type=jnp.float32) + b5


# ----------------------------------------------------------------------------
if __name__ == "__main__":
    # Small shapes consistent with the module:
    #   num_strains (input features) = 4, hidden_dim = 32, slice_len = 8, batch = 2
    num_strains, hidden, slice_len, batch = 4, 32, 8, 2

    key = jax.random.PRNGKey(0)
    k_x, k_p = jax.random.split(key)
    params = init_params(k_p, num_strains, hidden, slice_len)
    x = jax.random.normal(k_x, (slice_len, batch, num_strains), jnp.float32)

    out = jax.block_until_ready(ffn_forward(x, params))
    ref = jax.block_until_ready(ffn_reference(x, params))

    assert out.shape == (batch, num_strains)
    assert jnp.allclose(out, ref, atol=1e-2, rtol=1e-2), "mismatch vs reference"

    print("KERNEL_OK")
</pallas_src>

<mosaic_0001>
module attributes {stable_mosaic.version = 11 : i64} {
  func.func @kernel(%arg0: i32, %arg1: memref<16x4xf32, #tpu.memory_space<vmem>>, %arg2: memref<4x128xbf16, #tpu.memory_space<vmem>>, %arg3: memref<1x128xf32, #tpu.memory_space<vmem>>, %arg4: memref<128x128xbf16, #tpu.memory_space<vmem>>, %arg5: memref<1x128xf32, #tpu.memory_space<vmem>>, %arg6: memref<128x128xbf16, #tpu.memory_space<vmem>>, %arg7: memref<1x128xf32, #tpu.memory_space<vmem>>, %arg8: memref<128x128xbf16, #tpu.memory_space<vmem>>, %arg9: memref<1x128xf32, #tpu.memory_space<vmem>>, %arg10: memref<8x128x128xbf16, #tpu.memory_space<vmem>>, %arg11: memref<1x128xf32, #tpu.memory_space<vmem>>, %arg12: memref<2x128xf32, #tpu.memory_space<vmem>>) attributes {dimension_semantics = [#tpu.dimension_semantics<parallel>], iteration_bounds = array<i64: 1>, scalar_prefetch = 0 : i64, scratch_operands = 0 : i64, tpu.core_type = #tpu.core_type<tc>, window_params = [{transform_indices = @transform_0, window_bounds = array<i64: 16, 4>}, {pipeline_mode = #tpu.pipeline_mode<synchronous>, transform_indices = @transform_1, window_bounds = array<i64: 4, 128>}, {pipeline_mode = #tpu.pipeline_mode<synchronous>, transform_indices = @transform_2, window_bounds = array<i64: 1, 128>}, {pipeline_mode = #tpu.pipeline_mode<synchronous>, transform_indices = @transform_3, window_bounds = array<i64: 128, 128>}, {pipeline_mode = #tpu.pipeline_mode<synchronous>, transform_indices = @transform_4, window_bounds = array<i64: 1, 128>}, {pipeline_mode = #tpu.pipeline_mode<synchronous>, transform_indices = @transform_5, window_bounds = array<i64: 128, 128>}, {pipeline_mode = #tpu.pipeline_mode<synchronous>, transform_indices = @transform_6, window_bounds = array<i64: 1, 128>}, {pipeline_mode = #tpu.pipeline_mode<synchronous>, transform_indices = @transform_7, window_bounds = array<i64: 128, 128>}, {pipeline_mode = #tpu.pipeline_mode<synchronous>, transform_indices = @transform_8, window_bounds = array<i64: 1, 128>}, {pipeline_mode = #tpu.pipeline_mode<synchronous>, transform_indices = @transform_9, window_bounds = array<i64: 8, 128, 128>}, {pipeline_mode = #tpu.pipeline_mode<synchronous>, transform_indices = @transform_10, window_bounds = array<i64: 1, 128>}, {transform_indices = @transform_11, window_bounds = array<i64: 2, 128>}]} {
    %c0 = arith.constant 0 : index
    %c0_0 = arith.constant 0 : index
    %0 = vector.load %arg1[%c0, %c0_0] : memref<16x4xf32, #tpu.memory_space<vmem>>, vector<16x4xf32>
    %1 = arith.truncf %0 : vector<16x4xf32> to vector<16x4xbf16>
    %c0_1 = arith.constant 0 : index
    %c0_2 = arith.constant 0 : index
    %2 = vector.load %arg2[%c0_1, %c0_2] : memref<4x128xbf16, #tpu.memory_space<vmem>>, vector<4x128xbf16>
    %cst = arith.constant dense<0.000000e+00> : vector<16x128xf32>
    %3 = tpu.matmul %1, %2, %cst {dimension_numbers = #tpu.dot_dimension_numbers<[1], [0], [0], [1], [0, 0, 1, 1], [], []>} : vector<16x4xbf16>, vector<4x128xbf16>, vector<16x128xf32> -> vector<16x128xf32>
    %c0_3 = arith.constant 0 : index
    %c0_4 = arith.constant 0 : index
    %4 = vector.load %arg3[%c0_3, %c0_4] : memref<1x128xf32, #tpu.memory_space<vmem>>, vector<1x128xf32>
    %5 = vector.broadcast %4 : vector<1x128xf32> to vector<16x128xf32>
    %6 = arith.addf %3, %5 : vector<16x128xf32>
    %cst_5 = arith.constant 0.000000e+00 : f32
    %7 = vector.broadcast %cst_5 : f32 to vector<16x128xf32>
    %8 = arith.maximumf %6, %7 : vector<16x128xf32>
    %9 = arith.truncf %8 : vector<16x128xf32> to vector<16x128xbf16>
    %c0_6 = arith.constant 0 : index
    %c0_7 = arith.constant 0 : index
    %10 = vector.load %arg4[%c0_6, %c0_7] : memref<128x128xbf16, #tpu.memory_space<vmem>>, vector<128x128xbf16>
    %cst_8 = arith.constant dense<0.000000e+00> : vector<16x128xf32>
    %11 = tpu.matmul %9, %10, %cst_8 {dimension_numbers = #tpu.dot_dimension_numbers<[1], [0], [0], [1], [0, 0, 1, 1], [], []>} : vector<16x128xbf16>, vector<128x128xbf16>, vector<16x128xf32> -> vector<16x128xf32>
    %c0_9 = arith.constant 0 : index
    %c0_10 = arith.constant 0 : index
    %12 = vector.load %arg5[%c0_9, %c0_10] : memref<1x128xf32, #tpu.memory_space<vmem>>, vector<1x128xf32>
    %13 = vector.broadcast %12 : vector<1x128xf32> to vector<16x128xf32>
    %14 = arith.addf %11, %13 : vector<16x128xf32>
    %cst_11 = arith.constant 0.000000e+00 : f32
    %15 = vector.broadcast %cst_11 : f32 to vector<16x128xf32>
    %16 = arith.maximumf %14, %15 : vector<16x128xf32>
    %17 = arith.truncf %16 : vector<16x128xf32> to vector<16x128xbf16>
    %c0_12 = arith.constant 0 : index
    %c0_13 = arith.constant 0 : index
    %18 = vector.load %arg6[%c0_12, %c0_13] : memref<128x128xbf16, #tpu.memory_space<vmem>>, vector<128x128xbf16>
    %cst_14 = arith.constant dense<0.000000e+00> : vector<16x128xf32>
    %19 = tpu.matmul %17, %18, %cst_14 {dimension_numbers = #tpu.dot_dimension_numbers<[1], [0], [0], [1], [0, 0, 1, 1], [], []>} : vector<16x128xbf16>, vector<128x128xbf16>, vector<16x128xf32> -> vector<16x128xf32>
    %c0_15 = arith.constant 0 : index
    %c0_16 = arith.constant 0 : index
    %20 = vector.load %arg7[%c0_15, %c0_16] : memref<1x128xf32, #tpu.memory_space<vmem>>, vector<1x128xf32>
    %21 = vector.broadcast %20 : vector<1x128xf32> to vector<16x128xf32>
    %22 = arith.addf %19, %21 : vector<16x128xf32>
    %cst_17 = arith.constant 0.000000e+00 : f32
    %23 = vector.broadcast %cst_17 : f32 to vector<16x128xf32>
    %24 = arith.maximumf %22, %23 : vector<16x128xf32>
    %25 = arith.truncf %24 : vector<16x128xf32> to vector<16x128xbf16>
    %c0_18 = arith.constant 0 : index
    %c0_19 = arith.constant 0 : index
    %26 = vector.load %arg8[%c0_18, %c0_19] : memref<128x128xbf16, #tpu.memory_space<vmem>>, vector<128x128xbf16>
    %cst_20 = arith.constant dense<0.000000e+00> : vector<16x128xf32>
    %27 = tpu.matmul %25, %26, %cst_20 {dimension_numbers = #tpu.dot_dimension_numbers<[1], [0], [0], [1], [0, 0, 1, 1], [], []>} : vector<16x128xbf16>, vector<128x128xbf16>, vector<16x128xf32> -> vector<16x128xf32>
    %c0_21 = arith.constant 0 : index
    %c0_22 = arith.constant 0 : index
    %28 = vector.load %arg9[%c0_21, %c0_22] : memref<1x128xf32, #tpu.memory_space<vmem>>, vector<1x128xf32>
    %29 = vector.broadcast %28 : vector<1x128xf32> to vector<16x128xf32>
    %30 = arith.addf %27, %29 : vector<16x128xf32>
    %cst_23 = arith.constant 0.000000e+00 : f32
    %31 = vector.broadcast %cst_23 : f32 to vector<16x128xf32>
    %32 = arith.maximumf %30, %31 : vector<16x128xf32>
    %33 = vector.shape_cast %32 : vector<16x128xf32> to vector<2x8x128xf32>
    %cst_24 = arith.constant 0.000000e+00 : f32
    %34 = vector.broadcast %cst_24 : f32 to vector<2x128xf32>
    %35 = vector.extract_strided_slice %33 {offsets = [0, 0, 0], sizes = [2, 1, 128], strides = [1, 1, 1]} : vector<2x8x128xf32> to vector<2x1x128xf32>
    %36 = vector.shape_cast %35 : vector<2x1x128xf32> to vector<2x128xf32>
    %37 = arith.truncf %36 : vector<2x128xf32> to vector<2x128xbf16>
    %c0_25 = arith.constant 0 : index
    %c0_26 = arith.constant 0 : index
    %c0_27 = arith.constant 0 : index
    %38 = vector.load %arg10[%c0_25, %c0_26, %c0_27] : memref<8x128x128xbf16, #tpu.memory_space<vmem>>, vector<1x128x128xbf16>
    %39 = vector.shape_cast %38 : vector<1x128x128xbf16> to vector<128x128xbf16>
    %cst_28 = arith.constant dense<0.000000e+00> : vector<2x128xf32>
    %40 = tpu.matmul %37, %39, %cst_28 {dimension_numbers = #tpu.dot_dimension_numbers<[1], [0], [0], [1], [0, 0, 1, 1], [], []>} : vector<2x128xbf16>, vector<128x128xbf16>, vector<2x128xf32> -> vector<2x128xf32>
    %41 = arith.addf %34, %40 : vector<2x128xf32>
    %42 = vector.extract_strided_slice %33 {offsets = [0, 1, 0], sizes = [2, 1, 128], strides = [1, 1, 1]} : vector<2x8x128xf32> to vector<2x1x128xf32>
    %43 = vector.shape_cast %42 : vector<2x1x128xf32> to vector<2x128xf32>
    %44 = arith.truncf %43 : vector<2x128xf32> to vector<2x128xbf16>
    %c1 = arith.constant 1 : index
    %c0_29 = arith.constant 0 : index
    %c0_30 = arith.constant 0 : index
    %45 = vector.load %arg10[%c1, %c0_29, %c0_30] : memref<8x128x128xbf16, #tpu.memory_space<vmem>>, vector<1x128x128xbf16>
    %46 = vector.shape_cast %45 : vector<1x128x128xbf16> to vector<128x128xbf16>
    %cst_31 = arith.constant dense<0.000000e+00> : vector<2x128xf32>
    %47 = tpu.matmul %44, %46, %cst_31 {dimension_numbers = #tpu.dot_dimension_numbers<[1], [0], [0], [1], [0, 0, 1, 1], [], []>} : vector<2x128xbf16>, vector<128x128xbf16>, vector<2x128xf32> -> vector<2x128xf32>
    %48 = arith.addf %41, %47 : vector<2x128xf32>
    %49 = vector.extract_strided_slice %33 {offsets = [0, 2, 0], sizes = [2, 1, 128], strides = [1, 1, 1]} : vector<2x8x128xf32> to vector<2x1x128xf32>
    %50 = vector.shape_cast %49 : vector<2x1x128xf32> to vector<2x128xf32>
    %51 = arith.truncf %50 : vector<2x128xf32> to vector<2x128xbf16>
    %c2 = arith.constant 2 : index
    %c0_32 = arith.constant 0 : index
    %c0_33 = arith.constant 0 : index
    %52 = vector.load %arg10[%c2, %c0_32, %c0_33] : memref<8x128x128xbf16, #tpu.memory_space<vmem>>, vector<1x128x128xbf16>
    %53 = vector.shape_cast %52 : vector<1x128x128xbf16> to vector<128x128xbf16>
    %cst_34 = arith.constant dense<0.000000e+00> : vector<2x128xf32>
    %54 = tpu.matmul %51, %53, %cst_34 {dimension_numbers = #tpu.dot_dimension_numbers<[1], [0], [0], [1], [0, 0, 1, 1], [], []>} : vector<2x128xbf16>, vector<128x128xbf16>, vector<2x128xf32> -> vector<2x128xf32>
    %55 = arith.addf %48, %54 : vector<2x128xf32>
    %56 = vector.extract_strided_slice %33 {offsets = [0, 3, 0], sizes = [2, 1, 128], strides = [1, 1, 1]} : vector<2x8x128xf32> to vector<2x1x128xf32>
    %57 = vector.shape_cast %56 : vector<2x1x128xf32> to vector<2x128xf32>
    %58 = arith.truncf %57 : vector<2x128xf32> to vector<2x128xbf16>
    %c3 = arith.constant 3 : index
    %c0_35 = arith.constant 0 : index
    %c0_36 = arith.constant 0 : index
    %59 = vector.load %arg10[%c3, %c0_35, %c0_36] : memref<8x128x128xbf16, #tpu.memory_space<vmem>>, vector<1x128x128xbf16>
    %60 = vector.shape_cast %59 : vector<1x128x128xbf16> to vector<128x128xbf16>
    %cst_37 = arith.constant dense<0.000000e+00> : vector<2x128xf32>
    %61 = tpu.matmul %58, %60, %cst_37 {dimension_numbers = #tpu.dot_dimension_numbers<[1], [0], [0], [1], [0, 0, 1, 1], [], []>} : vector<2x128xbf16>, vector<128x128xbf16>, vector<2x128xf32> -> vector<2x128xf32>
    %62 = arith.addf %55, %61 : vector<2x128xf32>
    %63 = vector.extract_strided_slice %33 {offsets = [0, 4, 0], sizes = [2, 1, 128], strides = [1, 1, 1]} : vector<2x8x128xf32> to vector<2x1x128xf32>
    %64 = vector.shape_cast %63 : vector<2x1x128xf32> to vector<2x128xf32>
    %65 = arith.truncf %64 : vector<2x128xf32> to vector<2x128xbf16>
    %c4 = arith.constant 4 : index
    %c0_38 = arith.constant 0 : index
    %c0_39 = arith.constant 0 : index
    %66 = vector.load %arg10[%c4, %c0_38, %c0_39] : memref<8x128x128xbf16, #tpu.memory_space<vmem>>, vector<1x128x128xbf16>
    %67 = vector.shape_cast %66 : vector<1x128x128xbf16> to vector<128x128xbf16>
    %cst_40 = arith.constant dense<0.000000e+00> : vector<2x128xf32>
    %68 = tpu.matmul %65, %67, %cst_40 {dimension_numbers = #tpu.dot_dimension_numbers<[1], [0], [0], [1], [0, 0, 1, 1], [], []>} : vector<2x128xbf16>, vector<128x128xbf16>, vector<2x128xf32> -> vector<2x128xf32>
    %69 = arith.addf %62, %68 : vector<2x128xf32>
    %70 = vector.extract_strided_slice %33 {offsets = [0, 5, 0], sizes = [2, 1, 128], strides = [1, 1, 1]} : vector<2x8x128xf32> to vector<2x1x128xf32>
    %71 = vector.shape_cast %70 : vector<2x1x128xf32> to vector<2x128xf32>
    %72 = arith.truncf %71 : vector<2x128xf32> to vector<2x128xbf16>
    %c5 = arith.constant 5 : index
    %c0_41 = arith.constant 0 : index
    %c0_42 = arith.constant 0 : index
    %73 = vector.load %arg10[%c5, %c0_41, %c0_42] : memref<8x128x128xbf16, #tpu.memory_space<vmem>>, vector<1x128x128xbf16>
    %74 = vector.shape_cast %73 : vector<1x128x128xbf16> to vector<128x128xbf16>
    %cst_43 = arith.constant dense<0.000000e+00> : vector<2x128xf32>
    %75 = tpu.matmul %72, %74, %cst_43 {dimension_numbers = #tpu.dot_dimension_numbers<[1], [0], [0], [1], [0, 0, 1, 1], [], []>} : vector<2x128xbf16>, vector<128x128xbf16>, vector<2x128xf32> -> vector<2x128xf32>
    %76 = arith.addf %69, %75 : vector<2x128xf32>
    %77 = vector.extract_strided_slice %33 {offsets = [0, 6, 0], sizes = [2, 1, 128], strides = [1, 1, 1]} : vector<2x8x128xf32> to vector<2x1x128xf32>
    %78 = vector.shape_cast %77 : vector<2x1x128xf32> to vector<2x128xf32>
    %79 = arith.truncf %78 : vector<2x128xf32> to vector<2x128xbf16>
    %c6 = arith.constant 6 : index
    %c0_44 = arith.constant 0 : index
    %c0_45 = arith.constant 0 : index
    %80 = vector.load %arg10[%c6, %c0_44, %c0_45] : memref<8x128x128xbf16, #tpu.memory_space<vmem>>, vector<1x128x128xbf16>
    %81 = vector.shape_cast %80 : vector<1x128x128xbf16> to vector<128x128xbf16>
    %cst_46 = arith.constant dense<0.000000e+00> : vector<2x128xf32>
    %82 = tpu.matmul %79, %81, %cst_46 {dimension_numbers = #tpu.dot_dimension_numbers<[1], [0], [0], [1], [0, 0, 1, 1], [], []>} : vector<2x128xbf16>, vector<128x128xbf16>, vector<2x128xf32> -> vector<2x128xf32>
    %83 = arith.addf %76, %82 : vector<2x128xf32>
    %84 = vector.extract_strided_slice %33 {offsets = [0, 7, 0], sizes = [2, 1, 128], strides = [1, 1, 1]} : vector<2x8x128xf32> to vector<2x1x128xf32>
    %85 = vector.shape_cast %84 : vector<2x1x128xf32> to vector<2x128xf32>
    %86 = arith.truncf %85 : vector<2x128xf32> to vector<2x128xbf16>
    %c7 = arith.constant 7 : index
    %c0_47 = arith.constant 0 : index
    %c0_48 = arith.constant 0 : index
    %87 = vector.load %arg10[%c7, %c0_47, %c0_48] : memref<8x128x128xbf16, #tpu.memory_space<vmem>>, vector<1x128x128xbf16>
    %88 = vector.shape_cast %87 : vector<1x128x128xbf16> to vector<128x128xbf16>
    %cst_49 = arith.constant dense<0.000000e+00> : vector<2x128xf32>
    %89 = tpu.matmul %86, %88, %cst_49 {dimension_numbers = #tpu.dot_dimension_numbers<[1], [0], [0], [1], [0, 0, 1, 1], [], []>} : vector<2x128xbf16>, vector<128x128xbf16>, vector<2x128xf32> -> vector<2x128xf32>
    %90 = arith.addf %83, %89 : vector<2x128xf32>
    %c0_50 = arith.constant 0 : index
    %c0_51 = arith.constant 0 : index
    %91 = vector.load %arg11[%c0_50, %c0_51] : memref<1x128xf32, #tpu.memory_space<vmem>>, vector<1x128xf32>
    %92 = vector.broadcast %91 : vector<1x128xf32> to vector<2x128xf32>
    %93 = arith.addf %90, %92 : vector<2x128xf32>
    %c0_52 = arith.constant 0 : index
    %c0_53 = arith.constant 0 : index
    %94 = vector.load %arg12[%c0_52, %c0_53] : memref<2x128xf32, #tpu.memory_space<vmem>>, vector<2x128xf32>
    tpu.vector_store %arg12[%c0_52, %c0_53], %93 {strides = array<i32>} : memref<2x128xf32, #tpu.memory_space<vmem>>, vector<2x128xf32>,
    return
  }
  func.func @transform_0(%arg0: i32) -> (i32, i32) {
    %c0_i32 = arith.constant 0 : i32
    %c0_i32_0 = arith.constant 0 : i32
    return %arg0, %c0_i32 : i32, i32
  }
  func.func @transform_1(%arg0: i32) -> (i32, i32) {
    %c0_i32 = arith.constant 0 : i32
    %c0_i32_0 = arith.constant 0 : i32
    %c0_i32_1 = arith.constant 0 : i32
    return %c0_i32, %c0_i32_0 : i32, i32
  }
  func.func @transform_2(%arg0: i32) -> (i32, i32) {
    %c0_i32 = arith.constant 0 : i32
    %c0_i32_0 = arith.constant 0 : i32
    %c0_i32_1 = arith.constant 0 : i32
    return %c0_i32, %c0_i32_0 : i32, i32
  }
  func.func @transform_3(%arg0: i32) -> (i32, i32) {
    %c0_i32 = arith.constant 0 : i32
    %c0_i32_0 = arith.constant 0 : i32
    %c0_i32_1 = arith.constant 0 : i32
    return %c0_i32, %c0_i32_0 : i32, i32
  }
  func.func @transform_4(%arg0: i32) -> (i32, i32) {
    %c0_i32 = arith.constant 0 : i32
    %c0_i32_0 = arith.constant 0 : i32
    %c0_i32_1 = arith.constant 0 : i32
    return %c0_i32, %c0_i32_0 : i32, i32
  }
  func.func @transform_5(%arg0: i32) -> (i32, i32) {
    %c0_i32 = arith.constant 0 : i32
    %c0_i32_0 = arith.constant 0 : i32
    %c0_i32_1 = arith.constant 0 : i32
    return %c0_i32, %c0_i32_0 : i32, i32
  }
  func.func @transform_6(%arg0: i32) -> (i32, i32) {
    %c0_i32 = arith.constant 0 : i32
    %c0_i32_0 = arith.constant 0 : i32
    %c0_i32_1 = arith.constant 0 : i32
    return %c0_i32, %c0_i32_0 : i32, i32
  }
  func.func @transform_7(%arg0: i32) -> (i32, i32) {
    %c0_i32 = arith.constant 0 : i32
    %c0_i32_0 = arith.constant 0 : i32
    %c0_i32_1 = arith.constant 0 : i32
    return %c0_i32, %c0_i32_0 : i32, i32
  }
  func.func @transform_8(%arg0: i32) -> (i32, i32) {
    %c0_i32 = arith.constant 0 : i32
    %c0_i32_0 = arith.constant 0 : i32
    %c0_i32_1 = arith.constant 0 : i32
    return %c0_i32, %c0_i32_0 : i32, i32
  }
  func.func @transform_9(%arg0: i32) -> (i32, i32, i32) {
    %c0_i32 = arith.constant 0 : i32
    %c0_i32_0 = arith.constant 0 : i32
    %c0_i32_1 = arith.constant 0 : i32
    %c0_i32_2 = arith.constant 0 : i32
    return %c0_i32, %c0_i32_0, %c0_i32_1 : i32, i32, i32
  }
  func.func @transform_10(%arg0: i32) -> (i32, i32) {
    %c0_i32 = arith.constant 0 : i32
    %c0_i32_0 = arith.constant 0 : i32
    %c0_i32_1 = arith.constant 0 : i32
    return %c0_i32, %c0_i32_0 : i32, i32
  }
  func.func @transform_11(%arg0: i32) -> (i32, i32) {
    %c0_i32 = arith.constant 0 : i32
    %c0_i32_0 = arith.constant 0 : i32
    return %arg0, %c0_i32 : i32, i32
  }
}

</mosaic_0001>

<bundles_post_ra>
// kernel: tpu_custom_call.1
= control target key start
LH: loop header
LB: loop body
LE: loop exit
PB: predicated region body
PF: predicated region fallthrough
CT: control target
= control target key end

     0   :  { %16 = vsyncpa [#allocation3], 0  ;;  %s2321_s0 = inlined_call_operand.vmem [shape: f32[16,4], index: 0, kind: input, shape index: {}]   ;;  %s2322_s1 = inlined_call_operand.vmem [shape: bf16[4,128], index: 1, kind: input, shape index: {}]   ;;  %s2323_s2 = inlined_call_operand.vmem [shape: f32[1,128], index: 2, kind: input, shape index: {}]   ;;  %s2324_s3 = inlined_call_operand.hbm [shape: bf16[128,128], index: 3, kind: input, shape index: {}]   ;;  %s2325_s4 = inlined_call_operand.vmem [shape: f32[1,128], index: 4, kind: input, shape index: {}]   ;;  %s2326_s5 = inlined_call_operand.hbm [shape: bf16[128,128], index: 5, kind: input, shape index: {}]   ;;  %s2327_s6 = inlined_call_operand.vmem [shape: f32[1,128], index: 6, kind: input, shape index: {}]   ;;  %s2328_s7 = inlined_call_operand.hbm [shape: bf16[128,128], index: 7, kind: input, shape index: {}]   ;;  %s2329_s8 = inlined_call_operand.vmem [shape: f32[1,128], index: 8, kind: input, shape index: {}]   ;;  %s2330_s9 = inlined_call_operand.hbm [shape: bf16[8,128,128], index: 9, kind: input, shape index: {}]   ;;  %s2331_s10 = inlined_call_operand.vmem [shape: f32[1,128], index: 10, kind: input, shape index: {}]   ;;  %s2332_s11 = inlined_call_operand.hbm [shape: f32[2,128], index: 11, kind: output, shape index: {}]  }
   0x1   :  { %17 = vsyncpa [#allocation6], 0 }
   0x2   :  { %18 = vsyncpa [#allocation9], 0 }
   0x3   :  { %19 = vsyncpa [#allocation4], 0  ;;  %s2044_s17 = smov [#allocation5]   ;;  %s2045_s19 = smov [#allocation2]  }
   0x4   :  { %s45_s18 = sshll.u32 %s2044_s17, 4  ;;  %s31_s20 = sshll.u32 %s2045_s19, 4  ;;  %s46_s18 = int_to_ptr.vmem [resolvable:$true] %s45_s18  ;;  %s32_s20 = int_to_ptr.vmem [resolvable:$true] %s31_s20 }
   0x5   :  { %s1944_s21 = scalar_lea.vmem %s46_s18, 1024  ;;  %p1949_p1 = scmp.lt.s32.totalorder %s46_s18, %s46_s18 }
   0x6   :  { %p1945_p0 = scmp.ne.s32.totalorder %s46_s18, %s1944_s21  ;;  %p1950_p2 = scmp.lt.s32.totalorder %s1944_s21, %s1944_s21 }
   0x8   :  { %p1951_p3 = por %p1950_p2, %p1949_p1 }
   0xa   :  { %p1952_p4 = pnand %p1951_p3, %p1945_p0 }
   0xc   :  { %1955 = shalt.err (!%p1952_p4)
}
   0xd   :  { %s2046_s22 = smov 64   ;;  %s2047_s23 = smov 4  }
   0xe   :  { %51 = dma.hbm_to_vmem [thread:$0]  %s2326_s5, 1024, %s46_s18, [#allocation6], %s2046_s22, %s2046_s22, %s2047_s23  }
   0xf   :  { %s1964_s26 = scalar_lea.vmem %s32_s20, 1024  ;;  %p1969_p6 = scmp.lt.s32.totalorder %s32_s20, %s32_s20 }
  0x10   :  { %p1965_p5 = scmp.ne.s32.totalorder %s32_s20, %s1964_s26  ;;  %p1970_p7 = scmp.lt.s32.totalorder %s1964_s26, %s1964_s26 }
  0x12   :  { %p1971_p8 = por %p1970_p7, %p1969_p6 }
  0x14   :  { %p1972_p9 = pnand %p1971_p8, %p1965_p5 }
  0x16   :  { %1975 = shalt.err (!%p1972_p9)
}
  0x17   :  { %37 = dma.hbm_to_vmem [thread:$0]  %s2324_s3, 1024, %s32_s20, [#allocation3], %s2046_s22, %s2046_s22, %s2047_s23  }
  0x18   :  { %s2048_s29 = smov [#allocation7]   ;;  %s2049_s12 = smov [#allocation8]  }
  0x19   :  { %s59_s30 = sshll.u32 %s2048_s29, 4  ;;  %s73_s13 = sshll.u32 %s2049_s12, 4  ;;  %s60_s30 = int_to_ptr.vmem [resolvable:$true] %s59_s30  ;;  %s74_s13 = int_to_ptr.vmem [resolvable:$true] %s73_s13 }
  0x1a   :  { %s1984_s5 = scalar_lea.vmem %s60_s30, 1024  ;;  %p1989_p11 = scmp.lt.s32.totalorder %s60_s30, %s60_s30 }
  0x1b   :  { %p1985_p10 = scmp.ne.s32.totalorder %s60_s30, %s1984_s5  ;;  %p1990_p12 = scmp.lt.s32.totalorder %s1984_s5, %s1984_s5 }
  0x1d   :  { %p1991_p13 = por %p1990_p12, %p1989_p11 }
  0x1f   :  { %p1992_p0 = pnand %p1991_p13, %p1985_p10 }
  0x21   :  { %1995 = shalt.err (!%p1992_p0)
}
  0x22   :  { %65 = dma.hbm_to_vmem [thread:$0]  %s2328_s7, 1024, %s60_s30, [#allocation6], %s2046_s22, %s2046_s22, %s2047_s23  }
  0x23   :  { %s2004_s3 = scalar_lea.vmem %s74_s13, 8192  ;;  %p2009_p2 = scmp.lt.s32.totalorder %s74_s13, %s74_s13 }
  0x24   :  { %p2005_p1 = scmp.ne.s32.totalorder %s74_s13, %s2004_s3  ;;  %p2010_p3 = scmp.lt.s32.totalorder %s2004_s3, %s2004_s3 }
  0x26   :  { %p2011_p4 = por %p2010_p3, %p2009_p2 }
  0x28   :  { %p2012_p5 = pnand %p2011_p4, %p2005_p1 }
  0x2a   :  { %2015 = shalt.err (!%p2012_p5)
}
  0x2b   :  { %79 = dma.hbm_to_vmem [thread:$0]  %s2330_s9, 8192, %s74_s13, [#allocation9], %s2046_s22, %s2046_s22, %s2047_s23  }
  0x2c   :  { %2036 = dma.done.wait [#allocation3], 1024  }
  0x2d   :  { %2037 = vsyncadd [#allocation3], 4294966272 }
  0x2e   :  { %2038 = dma.done.wait [#allocation6], 2048  }
  0x2f   :  { %2039 = vsyncadd [#allocation6], 4294965248 }
  0x30   :  { %2040 = dma.done.wait [#allocation9], 8192  }
  0x31   :  { %2041 = vsyncadd [#allocation9], 4294959104  ;;  %v2050_v0 = vmov 0.0   ;;  %vm2051_vm0 = vmmov 0   ;;  %vm110_vm1 = vcmask 1041408   ;;  %v95_v2 = vld [vmem:[%s2321_s0] sm:$0xff] }
  0x32   :  { %1613 = vmatprep.subr.bf16.mxu0 %v2050_v0  ;;  %1615 = vmatprep.mubr.msk.bf16.mxu0 %vm2051_vm0, %v2050_v0  ;;  %v98_v1 = vld [vmem:[%s2322_s1] sm:$0x3]  ;;  %v96_v3 = vld [vmem:[%s2321_s0 + $0x8] sm:$0xff]  ;;  %v1848_v6 = vld [vmem:[#allocation2 + $0x38] sm:$0xff]   ;;  %vm106_vm2 = vcmask 31744   ;;  %vm542_vm3 = vcmask 1041409  }
  0x33   :  { %1619 = vmatprep.subr.bf16.mxu1 %v2050_v0  ;;  %1635 = vmatprep.mubr.msk.bf16.mxu1 %vm2051_vm0, %v2050_v0  ;;  %v112_v4 = vsel %vm110_vm1, %v98_v1, 0  ;;  %v97_v5 = vpack.c.bf16 %v96_v3, %v95_v2  ;;  %v1849_v7 = vld [vmem:[#allocation2 + $0x30] sm:$0xff]   ;;  %v1850_v8 = vld [vmem:[#allocation2 + $0x28] sm:$0xff]   ;;  %v1851_v9 = vld [vmem:[#allocation2 + $0x20] sm:$0xff]   ;;  %s2052_s26 = smov [#allocation10]  }
  0x34   :  { %1614 = vmatpush3.bf16.msra.mxu0 %v112_v4  ;;  %1620 = vmatpush3.bf16.msra.mxu1 %v1848_v6  ;;  %v1852_v10 = vld [vmem:[#allocation2 + $0x18] sm:$0xff]   ;;  %v1853_v11 = vld [vmem:[#allocation2 + $0x10] sm:$0xff]   ;;  %v1854_v12 = vld [vmem:[#allocation2 + $0x8] sm:$0xff]   ;;  %s1407_s27 = sshll.u32 %s2052_s26, 4  ;;  %s1408_s27 = int_to_ptr.vmem [resolvable:$true] %s1407_s27 }
  0x35   :  { %1639 = vmatprep.subr.bf16.mxu0 %v2050_v0  ;;  %1621 = vmatprep.subr.bf16.mxu1 %v2050_v0  ;;  %v1855_v13 = vld [vmem:[#allocation2] sm:$0xff]   ;;  %v1856_v14 = vld [vmem:[#allocation5 + $0x38] sm:$0xff]   ;;  %v1857_v15 = vld [vmem:[#allocation5 + $0x30] sm:$0xff]   ;;  %s2016_s28 = scalar_lea.vmem %s1408_s27, 32  ;;  %p2021_p7 = scmp.lt.s32.totalorder %s1408_s27, %s1408_s27 }
  0x36   :  { %v1858_v16 = vld [vmem:[#allocation5 + $0x28] sm:$0xff]   ;;  %v1859_v17 = vld [vmem:[#allocation5 + $0x20] sm:$0xff]   ;;  %v1860_v18 = vld [vmem:[#allocation5 + $0x18] sm:$0xff]   ;;  %p2017_p6 = scmp.ne.s32.totalorder %s1408_s27, %s2016_s28  ;;  %p2022_p8 = scmp.lt.s32.totalorder %s2016_s28, %s2016_s28 }
  0x37   :  { %1616 = vmatmul.mubr.msk.bf16.vlgmr.msra.gmra.mxu0 %vm106_vm2, %v97_v5  ;;  %v1418_v19 = vld [vmem:[%s2323_s2] ss:$0 sm:$0xff]  ;;  %v1861_v29 = vld [vmem:[#allocation5 + $0x10] sm:$0xff]   ;;  %v1862_v30 = vld [vmem:[#allocation5 + $0x8] sm:$0xff]  }
  0x38   :  { %1655 = vmatprep.mubr.msk.bf16.mxu0 %vm2051_vm0, %v2050_v0  ;;  %1622 = vmatpush3.bf16.msra.mxu1 %v1849_v7  ;;  %v1863_v31 = vld [vmem:[#allocation5] sm:$0xff]   ;;  %v1864_v32 = vld [vmem:[#allocation7 + $0x38] sm:$0xff]   ;;  %v1865_v33 = vld [vmem:[#allocation7 + $0x30] sm:$0xff]   ;;  %p2023_p9 = por %p2022_p8, %p2021_p7 }
  0x39   :  { %1623 = vmatprep.subr.bf16.mxu1 %v2050_v0  ;;  %1640 = vmatpush3.bf16.msra.mxu0 %v1856_v14  ;;  %v1866_v34 = vld [vmem:[#allocation7 + $0x28] sm:$0xff]   ;;  %v1867_v35 = vld [vmem:[#allocation7 + $0x20] sm:$0xff]   ;;  %v1868_v36 = vld [vmem:[#allocation7 + $0x18] sm:$0xff]  }
  0x3a   :  { %1641 = vmatprep.subr.bf16.mxu0 %v2050_v0  ;;  %v1420_v37 = vld [vmem:[%s2325_s4] ss:$0 sm:$0xff]  ;;  %v1869_v47 = vld [vmem:[#allocation7 + $0x10] sm:$0xff]   ;;  %v1870_v48 = vld [vmem:[#allocation7 + $0x8] sm:$0xff]   ;;  %p2024_p10 = pnand %p2023_p9, %p2017_p6 }
  0x3b   :  { %v1871_v49 = vld [vmem:[#allocation7] sm:$0xff]   ;;  %v1872_v50 = vld [vmem:[#allocation8 + $0x78] sm:$0xff]   ;;  %v1874_v51 = vld [vmem:[#allocation8 + $0x70] sm:$0xff]  }
  0x3c   :  { %1624 = vmatpush3.bf16.msra.mxu1 %v1850_v8  ;;  %v1876_v52 = vld [vmem:[#allocation8 + $0x68] sm:$0xff]   ;;  %v1878_v53 = vld [vmem:[#allocation8 + $0x60] sm:$0xff]   ;;  %v1873_v63 = vld [vmem:[#allocation8 + $0x38] sm:$0xff]  }
  0x3d   :  { %1625 = vmatprep.subr.bf16.mxu1 %v2050_v0  ;;  %1642 = vmatpush3.bf16.msra.mxu0 %v1857_v15  ;;  %v1429_v54 = vld [vmem:[%s2327_s6] ss:$0 sm:$0xff]  ;;  %v1875_v2 = vld [vmem:[#allocation8 + $0x30] sm:$0xff]   ;;  %v1877_v3 = vld [vmem:[#allocation8 + $0x28] sm:$0xff]  }
  0x3e   :  { %1643 = vmatprep.subr.bf16.mxu0 %v2050_v0  ;;  %v1879_v4 = vld [vmem:[#allocation8 + $0x20] sm:$0xff]   ;;  %v1880_v5 = vld [vmem:[#allocation8 + $0x58] sm:$0xff]   ;;  %v1882_v7 = vld [vmem:[#allocation8 + $0x50] sm:$0xff]  }
  0x3f   :  { %v1881_v6 = vld [vmem:[#allocation8 + $0x18] sm:$0xff]   ;;  %v1883_v8 = vld [vmem:[#allocation8 + $0x10] sm:$0xff]  }
  0x40   :  { %1626 = vmatpush3.bf16.msra.mxu1 %v1851_v9  ;;  %v1884_v9 = vld [vmem:[#allocation8 + $0x48] sm:$0xff]  }
  0x41   :  { %1627 = vmatprep.subr.bf16.mxu1 %v2050_v0  ;;  %1644 = vmatpush3.bf16.msra.mxu0 %v1858_v16 }
  0x42   :  { %1645 = vmatprep.subr.bf16.mxu0 %v2050_v0 }
  0x44   :  { %1628 = vmatpush3.bf16.msra.mxu1 %v1852_v10  ;;  %v1885_v10 = vld [vmem:[#allocation8 + $0x8] sm:$0xff]  }
  0x45   :  { %1629 = vmatprep.subr.bf16.mxu1 %v2050_v0  ;;  %1646 = vmatpush3.bf16.msra.mxu0 %v1859_v17 }
  0x46   :  { %1647 = vmatprep.subr.bf16.mxu0 %v2050_v0 }
  0x48   :  { %1630 = vmatpush3.bf16.msra.mxu1 %v1853_v11  ;;  %v1886_v11 = vld [vmem:[#allocation8 + $0x40] sm:$0xff]  }
  0x49   :  { %1631 = vmatprep.subr.bf16.mxu1 %v2050_v0  ;;  %1648 = vmatpush3.bf16.msra.mxu0 %v1860_v18 }
  0x4a   :  { %1649 = vmatprep.subr.bf16.mxu0 %v2050_v0 }
  0x4c   :  { %1632 = vmatpush3.bf16.msra.mxu1 %v1854_v12  ;;  %v1887_v12 = vld [vmem:[#allocation8] sm:$0xff]  }
  0x4d   :  { %1633 = vmatprep.subr.bf16.mxu1 %v2050_v0  ;;  %1650 = vmatpush3.bf16.msra.mxu0 %v1861_v29 }
  0x4e   :  { %1651 = vmatprep.subr.bf16.mxu0 %v2050_v0 }
  0x50   :  { %1634 = vmatpush3.bf16.msra.mxu1 %v1855_v13  ;;  %v1438_v13 = vld [vmem:[%s2329_s8] ss:$0 sm:$0xff] }
  0x51   :  { %1659 = vmatprep.subr.bf16.mxu1 %v2050_v0  ;;  %1652 = vmatpush3.bf16.msra.mxu0 %v1862_v30 }
  0x52   :  { %1653 = vmatprep.subr.bf16.mxu0 %v2050_v0 }
  0x55   :  { %1654 = vmatpush3.bf16.msra.mxu0 %v1863_v31 }
  0x56   :  { %1679 = vmatprep.subr.bf16.mxu0 %v2050_v0 }
  0xf7   :  { %v148_v20 = vpop.f32.mrf.mxu0 }
  0xf8   :  { %v149_v22 = vadd.f32 %v1418_v19, %v148_v20 }
  0xf9   :  { %v1617_v21 = vpop.f32.mrf.mxu0 }
  0xfa   :  { %v155_v26 = vmax.f32 %v149_v22, 0.0 }
  0xfb   :  { %v151_v23 = vpop.f32.mrf.mxu0 }
  0xfc   :  { %v152_v24 = vadd.f32 %v1418_v19, %v151_v23 }
  0xfd   :  { %v1618_v25 = vpop.f32.mrf.mxu0 }
  0xfe   :  { %v156_v27 = vmax.f32 %v152_v24, 0.0 }
 0x100   :  { %v157_v28 = vpack.c.bf16 %v156_v27, %v155_v26 }
 0x102   :  { %1636 = vmatmul.mubr.bf16.vlgmr.msra.gmra.mxu1 %v157_v28  ;;  %v1888_v28 = vld [vmem:[#allocation8 + $0xb8] sm:$0xff]  }
 0x103   :  { %1675 = vmatprep.mubr.msk.bf16.mxu1 %vm2051_vm0, %v2050_v0  ;;  %1660 = vmatpush3.bf16.msra.mxu1 %v1864_v32 }
 0x104   :  { %1661 = vmatprep.subr.bf16.mxu1 %v2050_v0 }
 0x107   :  { %1662 = vmatpush3.bf16.msra.mxu1 %v1865_v33 }
 0x108   :  { %1663 = vmatprep.subr.bf16.mxu1 %v2050_v0 }
 0x10b   :  { %1664 = vmatpush3.bf16.msra.mxu1 %v1866_v34 }
 0x10c   :  { %1665 = vmatprep.subr.bf16.mxu1 %v2050_v0 }
 0x10f   :  { %1666 = vmatpush3.bf16.msra.mxu1 %v1867_v35 }
 0x110   :  { %1667 = vmatprep.subr.bf16.mxu1 %v2050_v0 }
 0x113   :  { %1668 = vmatpush3.bf16.msra.mxu1 %v1868_v36  ;;  %v1889_v36 = vld [vmem:[#allocation8 + $0xf8] sm:$0xff]  }
 0x114   :  { %1669 = vmatprep.subr.bf16.mxu1 %v2050_v0 }
 0x117   :  { %1670 = vmatpush3.bf16.msra.mxu1 %v1869_v47  ;;  %v1891_v47 = vld [vmem:[#allocation8 + $0xf0] sm:$0xff]  }
 0x118   :  { %1671 = vmatprep.subr.bf16.mxu1 %v2050_v0 }
 0x11b   :  { %1672 = vmatpush3.bf16.msra.mxu1 %v1870_v48  ;;  %v1892_v48 = vld [vmem:[#allocation8 + $0xa8] sm:$0xff]  }
 0x11c   :  { %1673 = vmatprep.subr.bf16.mxu1 %v2050_v0 }
 0x11f   :  { %1674 = vmatpush3.bf16.msra.mxu1 %v1871_v49  ;;  %v1893_v49 = vld [vmem:[#allocation8 + $0xe8] sm:$0xff]  }
 0x120   :  { %1699 = vmatprep.subr.bf16.mxu1 %v2050_v0 }
 0x1c2   :  { %v263_v38 = vpop.f32.mrf.mxu1 }
 0x1c3   :  { %v264_v40 = vadd.f32 %v1420_v37, %v263_v38 }
 0x1c4   :  { %v1637_v39 = vpop.f32.mrf.mxu1 }
 0x1c5   :  { %v270_v44 = vmax.f32 %v264_v40, 0.0 }
 0x1c6   :  { %v266_v41 = vpop.f32.mrf.mxu1 }
 0x1c7   :  { %v267_v42 = vadd.f32 %v1420_v37, %v266_v41 }
 0x1c8   :  { %v1638_v43 = vpop.f32.mrf.mxu1 }
 0x1c9   :  { %v271_v45 = vmax.f32 %v267_v42, 0.0  ;;  %v1890_v43 = vld [vmem:[#allocation8 + $0xb0] sm:$0xff]  }
 0x1cb   :  { %v272_v46 = vpack.c.bf16 %v271_v45, %v270_v44 }
 0x1cd   :  { %1656 = vmatmul.mubr.bf16.vlgmr.msra.gmra.mxu0 %v272_v46 }
 0x1ce   :  { %1695 = vmatprep.mubr.msk.bf16.mxu0 %vm2051_vm0, %v2050_v0  ;;  %1680 = vmatpush3.bf16.msra.mxu0 %v1872_v50  ;;  %v1894_v50 = vld [vmem:[#allocation8 + $0xa0] sm:$0xff]  }
 0x1cf   :  { %1681 = vmatprep.subr.bf16.mxu0 %v2050_v0 }
 0x1d2   :  { %1682 = vmatpush3.bf16.msra.mxu0 %v1874_v51  ;;  %v1895_v51 = vld [vmem:[#allocation8 + $0xe0] sm:$0xff]  }
 0x1d3   :  { %1683 = vmatprep.subr.bf16.mxu0 %v2050_v0 }
 0x1d6   :  { %1684 = vmatpush3.bf16.msra.mxu0 %v1876_v52  ;;  %v1896_v52 = vld [vmem:[#allocation8 + $0x98] sm:$0xff]  }
 0x1d7   :  { %1685 = vmatprep.subr.bf16.mxu0 %v2050_v0 }
 0x1da   :  { %1686 = vmatpush3.bf16.msra.mxu0 %v1878_v53  ;;  %v1897_v53 = vld [vmem:[#allocation8 + $0xd8] sm:$0xff]  }
 0x1db   :  { %1687 = vmatprep.subr.bf16.mxu0 %v2050_v0 }
 0x1de   :  { %1688 = vmatpush3.bf16.msra.mxu0 %v1880_v5  ;;  %v1905_v5 = vld [vmem:[#allocation8 + $0x178] sm:$0xff]  }
 0x1df   :  { %1689 = vmatprep.subr.bf16.mxu0 %v2050_v0 }
 0x1e2   :  { %1690 = vmatpush3.bf16.msra.mxu0 %v1882_v7  ;;  %v1906_v7 = vld [vmem:[#allocation8 + $0x130] sm:$0xff]  }
 0x1e3   :  { %1691 = vmatprep.subr.bf16.mxu0 %v2050_v0 }
 0x1e6   :  { %1692 = vmatpush3.bf16.msra.mxu0 %v1884_v9  ;;  %v1908_v9 = vld [vmem:[#allocation8 + $0x128] sm:$0xff]  }
 0x1e7   :  { %1693 = vmatprep.subr.bf16.mxu0 %v2050_v0 }
 0x1ea   :  { %1694 = vmatpush3.bf16.msra.mxu0 %v1886_v11  ;;  %v1910_v11 = vld [vmem:[#allocation8 + $0x120] sm:$0xff]  }
 0x1eb   :  { %1719 = vmatprep.subr.bf16.mxu0 %v2050_v0 }
 0x28d   :  { %v378_v55 = vpop.f32.mrf.mxu0 }
 0x28e   :  { %v379_v57 = vadd.f32 %v1429_v54, %v378_v55  ;;  %v1899_v55 = vld [vmem:[#allocation8 + $0xd0] sm:$0xff]  }
 0x28f   :  { %v1657_v56 = vpop.f32.mrf.mxu0 }
 0x290   :  { %v385_v61 = vmax.f32 %v379_v57, 0.0  ;;  %v1900_v56 = vld [vmem:[#allocation8 + $0x88] sm:$0xff]  }
 0x291   :  { %v381_v58 = vpop.f32.mrf.mxu0  ;;  %v1901_v57 = vld [vmem:[#allocation8 + $0xc8] sm:$0xff]  }
 0x292   :  { %v382_v59 = vadd.f32 %v1429_v54, %v381_v58  ;;  %v1898_v54 = vld [vmem:[#allocation8 + $0x90] sm:$0xff]  }
 0x293   :  { %v1658_v60 = vpop.f32.mrf.mxu0 }
 0x294   :  { %v386_v62 = vmax.f32 %v382_v59, 0.0  ;;  %v1902_v59 = vld [vmem:[#allocation8 + $0x80] sm:$0xff]  }
 0x296   :  { %v387_v1 = vpack.c.bf16 %v386_v62, %v385_v61  ;;  %v1903_v62 = vld [vmem:[#allocation8 + $0xc0] sm:$0xff]  }
 0x298   :  { %1676 = vmatmul.mubr.bf16.vlgmr.msra.gmra.mxu1 %v387_v1 }
 0x299   :  { %1700 = vmatpush3.bf16.msra.mxu1 %v1873_v63  ;;  %1715 = vmatprep.mubr.msk.bf16.mxu1 %vm2051_vm0, %v2050_v0 }
 0x29a   :  { %1701 = vmatprep.subr.bf16.mxu1 %v2050_v0 }
 0x29d   :  { %1702 = vmatpush3.bf16.msra.mxu1 %v1875_v2  ;;  %v1904_v2 = vld [vmem:[#allocation8 + $0x138] sm:$0xff]  }
 0x29e   :  { %1703 = vmatprep.subr.bf16.mxu1 %v2050_v0 }
 0x2a1   :  { %1704 = vmatpush3.bf16.msra.mxu1 %v1877_v3 }
 0x2a2   :  { %1705 = vmatprep.subr.bf16.mxu1 %v2050_v0 }
 0x2a5   :  { %1706 = vmatpush3.bf16.msra.mxu1 %v1879_v4 }
 0x2a6   :  { %1707 = vmatprep.subr.bf16.mxu1 %v2050_v0 }
 0x2a9   :  { %1708 = vmatpush3.bf16.msra.mxu1 %v1881_v6 }
 0x2aa   :  { %1709 = vmatprep.subr.bf16.mxu1 %v2050_v0 }
 0x2ad   :  { %1710 = vmatpush3.bf16.msra.mxu1 %v1883_v8  ;;  %v1907_v8 = vld [vmem:[#allocation8 + $0x170] sm:$0xff]  }
 0x2ae   :  { %1711 = vmatprep.subr.bf16.mxu1 %v2050_v0 }
 0x2b1   :  { %1712 = vmatpush3.bf16.msra.mxu1 %v1885_v10  ;;  %v1909_v10 = vld [vmem:[#allocation8 + $0x168] sm:$0xff]  }
 0x2b2   :  { %1713 = vmatprep.subr.bf16.mxu1 %v2050_v0 }
 0x2b5   :  { %1714 = vmatpush3.bf16.msra.mxu1 %v1887_v12  ;;  %v1911_v12 = vld [vmem:[#allocation8 + $0x160] sm:$0xff]  }
 0x2b6   :  { %1739 = vmatprep.subr.bf16.mxu1 %v2050_v0 }
 0x358   :  { %v493_v14 = vpop.f32.mrf.mxu1 }
 0x359   :  { %v494_v15 = vadd.f32 %v1438_v13, %v493_v14  ;;  %v1913_v14 = vld [vmem:[#allocation8 + $0x158] sm:$0xff]  }
 0x35a   :  { %v1677_v16 = vpop.f32.mrf.mxu1 }
 0x35b   :  { %v500_v17 = vmax.f32 %v494_v15, 0.0  ;;  %v1914_v15 = vld [vmem:[#allocation8 + $0x110] sm:$0xff]  }
 0x35c   :  { %v496_v18 = vpop.f32.mrf.mxu1  ;;  %v1915_v16 = vld [vmem:[#allocation8 + $0x150] sm:$0xff]  }
 0x35d   :  { %v502_v19 = vpack.c.bf16 %v500_v17, %v500_v17  ;;  %v497_v20 = vadd.f32 %v1438_v13, %v496_v18  ;;  %v1912_v13 = vld [vmem:[#allocation8 + $0x118] sm:$0xff]   ;;  %v1916_v17 = vld [vmem:[#allocation8 + $0x108] sm:$0xff]  }
 0x35e   :  { %v1678_v21 = vpop.f32.mrf.mxu1  ;;  %v1917_v18 = vld [vmem:[#allocation8 + $0x148] sm:$0xff]  }
 0x35f   :  { %v2213_v22 = vunpack.c.l.b16 %v502_v19  ;;  %v501_v23 = vmax.f32 %v497_v20, 0.0  ;;  %v1918_v19 = vld [vmem:[#allocation8 + $0x100] sm:$0xff]   ;;  %v1920_v21 = vld [vmem:[#allocation8 + $0x1b8] sm:$0xff]  }
 0x360   :  { %v1919_v20 = vld [vmem:[#allocation8 + $0x140] sm:$0xff]  }
 0x361   :  { %v503_v24 = vpack.c.bf16 %v501_v23, %v501_v23  ;;  %v541_v26 = vrot.slane %v2213_v22, 1  ;;  %v965_v30 = vrot.slane %v2213_v22, 4  ;;  %v1076_v37 = vrot.slane %v2213_v22, 5  ;;  %v1921_v23 = vld [vmem:[#allocation8 + $0x1f8] sm:$0xff]  }
 0x362   :  { %v1187_v38 = vrot.slane %v2213_v22, 6  ;;  %v1298_v42 = vrot.slane %v2213_v22, 7  ;;  %v743_v60 = vrot.slane %v2213_v22, 2  ;;  %v854_v1 = vrot.slane %v2213_v22, 3 }
 0x363   :  { %v2215_v25 = vunpack.c.l.b16 %v503_v24 }
 0x365   :  { %v543_v27 = vsel %vm542_vm3, %v2215_v25, %v541_v26  ;;  %v634_v29 = vrot.slane %v2215_v25, 7  ;;  %v966_v32 = vrot.slane %v2215_v25, 3  ;;  %v1077_v33 = vrot.slane %v2215_v25, 4  ;;  %v1923_v26 = vld [vmem:[#allocation8 + $0x1f0] sm:$0xff]  }
 0x366   :  { %v544_v31 = vpack.c.b16 %v543_v27, %v543_v27  ;;  %v1188_v34 = vrot.slane %v2215_v25, 5  ;;  %v1299_v39 = vrot.slane %v2215_v25, 6  ;;  %v744_v58 = vrot.slane %v2215_v25, 1  ;;  %v1924_v27 = vld [vmem:[#allocation8 + $0x1a8] sm:$0xff]  }
 0x367   :  { %v635_v35 = vsel %vm542_vm3, %v634_v29, %v2213_v22  ;;  %v2231_v41 = vsel %vm542_vm3, %v966_v32, %v965_v30  ;;  %v2237_v44 = vsel %vm542_vm3, %v1077_v33, %v1076_v37  ;;  %v855_v61 = vrot.slane %v2215_v25, 2  ;;  %v1922_v25 = vld [vmem:[#allocation8 + $0x1b0] sm:$0xff]   ;;  %v1926_v29 = vld [vmem:[#allocation8 + $0x1a0] sm:$0xff]   ;;  %v1929_v32 = vld [vmem:[#allocation8 + $0x1d8] sm:$0xff]  }
 0x368   :  { %1696 = vmatmul.mubr.bf16.vlgmr.msra.gmra.mxu0 %v544_v31  ;;  %v636_v40 = vpack.c.b16 %v635_v35, %v635_v35  ;;  %v2240_v45 = vsel %vm542_vm3, %v1188_v34, %v1187_v38  ;;  %v2244_v46 = vsel %vm542_vm3, %v1299_v39, %v1298_v42  ;;  %v745_v63 = vsel %vm542_vm3, %v744_v58, %v743_v60  ;;  %v1927_v30 = vld [vmem:[#allocation8 + $0x1e0] sm:$0xff]   ;;  %v1928_v31 = vld [vmem:[#allocation8 + $0x198] sm:$0xff]   ;;  %v1930_v33 = vld [vmem:[#allocation8 + $0x190] sm:$0xff]  }
 0x369   :  { %1720 = vmatpush3.bf16.msra.mxu0 %v1888_v28  ;;  %1735 = vmatprep.mubr.msk.bf16.mxu0 %vm2051_vm0, %v2050_v0  ;;  %v856_v3 = vsel %vm542_vm3, %v855_v61, %v854_v1  ;;  %v746_v4 = vpack.c.b16 %v745_v63, %v745_v63  ;;  %v968_v22 = vpack.c.b16 %v2231_v41, %v2231_v41  ;;  %v1925_v28 = vld [vmem:[#allocation8 + $0x1e8] sm:$0xff]   ;;  %v1931_v34 = vld [vmem:[#allocation8 + $0x1d0] sm:$0xff]   ;;  %v1934_v37 = vld [vmem:[#allocation8 + $0x180] sm:$0xff]  }
 0x36a   :  { %1716 = vmatmul.mubr.bf16.vlgmr.msra.gmra.mxu1 %v636_v40  ;;  %1721 = vmatprep.subr.bf16.mxu0 %v2050_v0  ;;  %v857_v6 = vpack.c.b16 %v856_v3, %v856_v3  ;;  %v1079_v24 = vpack.c.b16 %v2237_v44, %v2237_v44  ;;  %v1932_v35 = vld [vmem:[#allocation8 + $0x188] sm:$0xff]   ;;  %v1935_v38 = vld [vmem:[#allocation8 + $0x1c0] sm:$0xff]   ;;  %v1190_v39 = vpack.c.b16 %v2240_v45, %v2240_v45 }
 0x36b   :  { %1740 = vmatpush3.bf16.msra.mxu1 %v1889_v36  ;;  %1755 = vmatprep.mubr.msk.bf16.mxu1 %vm2051_vm0, %v2050_v0  ;;  %v1933_v36 = vld [vmem:[#allocation8 + $0x1c8] sm:$0xff]   ;;  %v1301_v40 = vpack.c.b16 %v2244_v46, %v2244_v46 }
 0x36c   :  { %1741 = vmatprep.subr.bf16.mxu1 %v2050_v0 }
 0x36d   :  { %1722 = vmatpush3.bf16.msra.mxu0 %v1890_v43 }
 0x36e   :  { %1723 = vmatprep.subr.bf16.mxu0 %v2050_v0 }
 0x36f   :  { %1742 = vmatpush3.bf16.msra.mxu1 %v1891_v47 }
 0x370   :  { %1743 = vmatprep.subr.bf16.mxu1 %v2050_v0 }
 0x371   :  { %1724 = vmatpush3.bf16.msra.mxu0 %v1892_v48 }
 0x372   :  { %1725 = vmatprep.subr.bf16.mxu0 %v2050_v0 }
 0x373   :  { %1744 = vmatpush3.bf16.msra.mxu1 %v1893_v49 }
 0x374   :  { %1745 = vmatprep.subr.bf16.mxu1 %v2050_v0 }
 0x375   :  { %1726 = vmatpush3.bf16.msra.mxu0 %v1894_v50 }
 0x376   :  { %1727 = vmatprep.subr.bf16.mxu0 %v2050_v0 }
 0x377   :  { %1746 = vmatpush3.bf16.msra.mxu1 %v1895_v51 }
 0x378   :  { %1747 = vmatprep.subr.bf16.mxu1 %v2050_v0 }
 0x379   :  { %1728 = vmatpush3.bf16.msra.mxu0 %v1896_v52 }
 0x37a   :  { %1729 = vmatprep.subr.bf16.mxu0 %v2050_v0 }
 0x37b   :  { %1748 = vmatpush3.bf16.msra.mxu1 %v1897_v53 }
 0x37c   :  { %1749 = vmatprep.subr.bf16.mxu1 %v2050_v0 }
 0x37d   :  { %1730 = vmatpush3.bf16.msra.mxu0 %v1898_v54 }
 0x37e   :  { %1731 = vmatprep.subr.bf16.mxu0 %v2050_v0 }
 0x37f   :  { %1750 = vmatpush3.bf16.msra.mxu1 %v1899_v55 }
 0x380   :  { %1751 = vmatprep.subr.bf16.mxu1 %v2050_v0 }
 0x381   :  { %1732 = vmatpush3.bf16.msra.mxu0 %v1900_v56 }
 0x382   :  { %1733 = vmatprep.subr.bf16.mxu0 %v2050_v0 }
 0x383   :  { %1752 = vmatpush3.bf16.msra.mxu1 %v1901_v57 }
 0x384   :  { %1753 = vmatprep.subr.bf16.mxu1 %v2050_v0 }
 0x385   :  { %1734 = vmatpush3.bf16.msra.mxu0 %v1902_v59 }
 0x386   :  { %1759 = vmatprep.subr.bf16.mxu0 %v2050_v0 }
 0x387   :  { %1754 = vmatpush3.bf16.msra.mxu1 %v1903_v62 }
 0x388   :  { %1736 = vmatmul.mubr.bf16.vlgmr.msra.gmra.mxu0 %v746_v4  ;;  %1779 = vmatprep.subr.bf16.mxu1 %v2050_v0 }
 0x389   :  { %1760 = vmatpush3.bf16.msra.mxu0 %v1904_v2  ;;  %1775 = vmatprep.mubr.msk.bf16.mxu0 %vm2051_vm0, %v2050_v0 }
 0x38a   :  { %1756 = vmatmul.mubr.bf16.vlgmr.msra.gmra.mxu1 %v857_v6  ;;  %1761 = vmatprep.subr.bf16.mxu0 %v2050_v0 }
 0x38b   :  { %1780 = vmatpush3.bf16.msra.mxu1 %v1905_v5  ;;  %1795 = vmatprep.mubr.msk.bf16.mxu1 %vm2051_vm0, %v2050_v0 }
 0x38c   :  { %1781 = vmatprep.subr.bf16.mxu1 %v2050_v0 }
 0x38d   :  { %1762 = vmatpush3.bf16.msra.mxu0 %v1906_v7 }
 0x38e   :  { %1763 = vmatprep.subr.bf16.mxu0 %v2050_v0 }
 0x38f   :  { %1782 = vmatpush3.bf16.msra.mxu1 %v1907_v8 }
 0x390   :  { %1783 = vmatprep.subr.bf16.mxu1 %v2050_v0 }
 0x391   :  { %1764 = vmatpush3.bf16.msra.mxu0 %v1908_v9 }
 0x392   :  { %1765 = vmatprep.subr.bf16.mxu0 %v2050_v0 }
 0x393   :  { %1784 = vmatpush3.bf16.msra.mxu1 %v1909_v10  ;;  %v1511_v10 = vld [vmem:[%s2331_s10] ss:$0 sm:$0xff] }
 0x394   :  { %1785 = vmatprep.subr.bf16.mxu1 %v2050_v0 }
 0x395   :  { %1766 = vmatpush3.bf16.msra.mxu0 %v1910_v11 }
 0x396   :  { %1767 = vmatprep.subr.bf16.mxu0 %v2050_v0 }
 0x397   :  { %1786 = vmatpush3.bf16.msra.mxu1 %v1911_v12 }
 0x398   :  { %1787 = vmatprep.subr.bf16.mxu1 %v2050_v0 }
 0x399   :  { %1768 = vmatpush3.bf16.msra.mxu0 %v1912_v13 }
 0x39a   :  { %1769 = vmatprep.subr.bf16.mxu0 %v2050_v0 }
 0x39b   :  { %1788 = vmatpush3.bf16.msra.mxu1 %v1913_v14 }
 0x39c   :  { %1789 = vmatprep.subr.bf16.mxu1 %v2050_v0 }
 0x39d   :  { %1770 = vmatpush3.bf16.msra.mxu0 %v1914_v15 }
 0x39e   :  { %1771 = vmatprep.subr.bf16.mxu0 %v2050_v0 }
 0x39f   :  { %1790 = vmatpush3.bf16.msra.mxu1 %v1915_v16 }
 0x3a0   :  { %1791 = vmatprep.subr.bf16.mxu1 %v2050_v0 }
 0x3a1   :  { %1772 = vmatpush3.bf16.msra.mxu0 %v1916_v17 }
 0x3a2   :  { %1773 = vmatprep.subr.bf16.mxu0 %v2050_v0 }
 0x3a3   :  { %1792 = vmatpush3.bf16.msra.mxu1 %v1917_v18 }
 0x3a4   :  { %1793 = vmatprep.subr.bf16.mxu1 %v2050_v0 }
 0x3a5   :  { %1774 = vmatpush3.bf16.msra.mxu0 %v1918_v19 }
 0x3a6   :  { %1799 = vmatprep.subr.bf16.mxu0 %v2050_v0 }
 0x3a7   :  { %1794 = vmatpush3.bf16.msra.mxu1 %v1919_v20 }
 0x3a8   :  { %1776 = vmatmul.mubr.bf16.vlgmr.msra.gmra.mxu0 %v968_v22  ;;  %1819 = vmatprep.subr.bf16.mxu1 %v2050_v0 }
 0x3a9   :  { %1800 = vmatpush3.bf16.msra.mxu0 %v1920_v21  ;;  %1815 = vmatprep.mubr.msk.bf16.mxu0 %vm2051_vm0, %v2050_v0 }
 0x3aa   :  { %1796 = vmatmul.mubr.bf16.vlgmr.msra.gmra.mxu1 %v1079_v24  ;;  %1801 = vmatprep.subr.bf16.mxu0 %v2050_v0 }
 0x3ab   :  { %1820 = vmatpush3.bf16.msra.mxu1 %v1921_v23  ;;  %1835 = vmatprep.mubr.msk.bf16.mxu1 %vm2051_vm0, %v2050_v0 }
 0x3ac   :  { %1821 = vmatprep.subr.bf16.mxu1 %v2050_v0 }
 0x3ad   :  { %1802 = vmatpush3.bf16.msra.mxu0 %v1922_v25 }
 0x3ae   :  { %1803 = vmatprep.subr.bf16.mxu0 %v2050_v0 }
 0x3af   :  { %1822 = vmatpush3.bf16.msra.mxu1 %v1923_v26 }
 0x3b0   :  { %1823 = vmatprep.subr.bf16.mxu1 %v2050_v0 }
 0x3b1   :  { %1804 = vmatpush3.bf16.msra.mxu0 %v1924_v27 }
 0x3b2   :  { %1805 = vmatprep.subr.bf16.mxu0 %v2050_v0 }
 0x3b3   :  { %1824 = vmatpush3.bf16.msra.mxu1 %v1925_v28 }
 0x3b4   :  { %1825 = vmatprep.subr.bf16.mxu1 %v2050_v0 }
 0x3b5   :  { %1806 = vmatpush3.bf16.msra.mxu0 %v1926_v29 }
 0x3b6   :  { %1807 = vmatprep.subr.bf16.mxu0 %v2050_v0 }
 0x3b7   :  { %1826 = vmatpush3.bf16.msra.mxu1 %v1927_v30 }
 0x3b8   :  { %1827 = vmatprep.subr.bf16.mxu1 %v2050_v0 }
 0x3b9   :  { %1808 = vmatpush3.bf16.msra.mxu0 %v1928_v31 }
 0x3ba   :  { %1809 = vmatprep.subr.bf16.mxu0 %v2050_v0 }
 0x3bb   :  { %1828 = vmatpush3.bf16.msra.mxu1 %v1929_v32 }
 0x3bc   :  { %1829 = vmatprep.subr.bf16.mxu1 %v2050_v0 }
 0x3bd   :  { %1810 = vmatpush3.bf16.msra.mxu0 %v1930_v33 }
 0x3be   :  { %1811 = vmatprep.subr.bf16.mxu0 %v2050_v0 }
 0x3bf   :  { %1830 = vmatpush3.bf16.msra.mxu1 %v1931_v34 }
 0x3c0   :  { %1831 = vmatprep.subr.bf16.mxu1 %v2050_v0 }
 0x3c1   :  { %1812 = vmatpush3.bf16.msra.mxu0 %v1932_v35 }
 0x3c2   :  { %1813 = vmatprep.subr.bf16.mxu0 %v2050_v0 }
 0x3c3   :  { %1832 = vmatpush3.bf16.msra.mxu1 %v1933_v36 }
 0x3c4   :  { %1833 = vmatprep.subr.bf16.mxu1 %v2050_v0 }
 0x3c5   :  { %1814 = vmatpush3.bf16.msra.mxu0 %v1934_v37 }
 0x3c7   :  { %1834 = vmatpush3.bf16.msra.mxu1 %v1935_v38 }
 0x3c8   :  { %1816 = vmatmul.mubr.bf16.vlgmr.msra.gmra.mxu0 %v1190_v39 }
 0x3ca   :  { %1836 = vmatmul.mubr.bf16.vlgmr.msra.gmra.mxu1 %v1301_v40 }
 0x428   :  { %v628_v41 = vpop.f32.mrf.mxu0 }
 0x42a   :  { %v1697_v42 = vpop.f32.mrf.mxu0  ;;  %v720_v43 = vpop.f32.mrf.mxu1 }
 0x42b   :  { %v721_v44 = vadd.f32 %v720_v43, %v628_v41 }
 0x42c   :  { %v631_v47 = vpop.f32.mrf.mxu0  ;;  %v1717_v48 = vpop.f32.mrf.mxu1 }
 0x42e   :  { %v1698_v49 = vpop.f32.mrf.mxu0  ;;  %v723_v50 = vpop.f32.mrf.mxu1 }
 0x430   :  { %v1718_v51 = vpop.f32.mrf.mxu1 }
 0x448   :  { %v830_v0 = vpop.f32.mrf.mxu0 }
 0x449   :  { %v836_v2 = vadd.f32 %v830_v0, %v721_v44 }
 0x44a   :  { %v1737_v52 = vpop.f32.mrf.mxu0  ;;  %v941_v53 = vpop.f32.mrf.mxu1 }
 0x44b   :  { %v947_v3 = vadd.f32 %v941_v53, %v836_v2 }
 0x44c   :  { %v833_v54 = vpop.f32.mrf.mxu0  ;;  %v1757_v45 = vpop.f32.mrf.mxu1 }
 0x44e   :  { %v1738_v55 = vpop.f32.mrf.mxu0  ;;  %v944_v56 = vpop.f32.mrf.mxu1 }
 0x450   :  { %v1758_v57 = vpop.f32.mrf.mxu1 }
 0x468   :  { %v1052_v58 = vpop.f32.mrf.mxu0 }
 0x469   :  { %v1058_v4 = vadd.f32 %v1052_v58, %v947_v3 }
 0x46a   :  { %v1777_v46 = vpop.f32.mrf.mxu0  ;;  %v1163_v59 = vpop.f32.mrf.mxu1 }
 0x46b   :  { %v1169_v5 = vadd.f32 %v1163_v59, %v1058_v4 }
 0x46c   :  { %v1055_v60 = vpop.f32.mrf.mxu0  ;;  %v1797_v61 = vpop.f32.mrf.mxu1 }
 0x46e   :  { %v1778_v62 = vpop.f32.mrf.mxu0  ;;  %v1166_v63 = vpop.f32.mrf.mxu1 }
 0x470   :  { %v1798_v1 = vpop.f32.mrf.mxu1 }
 0x488   :  { %v1274_v6 = vpop.f32.mrf.mxu0 }
 0x489   :  { %v1280_v7 = vadd.f32 %v1274_v6, %v1169_v5 }
 0x48a   :  { %v1817_v8 = vpop.f32.mrf.mxu0  ;;  %v1385_v9 = vpop.f32.mrf.mxu1 }
 0x48b   :  { %v1391_v11 = vadd.f32 %v1385_v9, %v1280_v7 }
 0x48c   :  { %v1277_v12 = vpop.f32.mrf.mxu0  ;;  %v1837_v13 = vpop.f32.mrf.mxu1 }
 0x48d   :  { %v1399_v14 = vadd.f32 %v1511_v10, %v1391_v11 }
 0x48e   :  { %v1818_v15 = vpop.f32.mrf.mxu0  ;;  %v1388_v16 = vpop.f32.mrf.mxu1 }
 0x48f   :  { %1400 = vst [vmem:[#allocation10] sm:$0x3] %v1399_v14 }
 0x490   :  { %v1838_v17 = vpop.f32.mrf.mxu1 }
 0x491   :  { %2027 = shalt.err (!%p2024_p10)
}
 0x492   :  { %1410 = dma.vmem_to_hbm [thread:$0]  %s1408_s27, 32, %s2332_s11, [#allocation4]  }
 0x493   :  { %2042 = dma.done.wait [#allocation4], 32  }
 0x494   :  { %2043 = vsyncadd [#allocation4], 4294967264 }
 0x495   :  { %1414 = vsyncpa [#allocation3], 1 }
 0x496   :  { %1415 = vsyncpa [#allocation6], 1 }
 0x497   :  { %1416 = vsyncpa [#allocation9], 1 }
 0x498   :  { %1417 = vsyncpa [#allocation4], 1 }

</bundles_post_ra>
